<compile_context>
chip_gen: v7x
topology: tpu7x:2x2x1
jax: 0.10.0
libtpu: 0.0.40
codegen_flags: <defaults>
</compile_context>

<pallas_src>
import math

import jax
import jax.numpy as jnp
from jax import lax
from jax.experimental import pallas as pl
from jax.experimental.pallas import tpu as pltpu

_LANE = 128
_SUBLANE = 8


def _round_up(v, m):
    return (v + m - 1) // m * m


def _pad2d(a, rows, cols):
    pr, pc = rows - a.shape[0], cols - a.shape[1]
    if pr or pc:
        a = jnp.pad(a, ((0, pr), (0, pc)))
    return a


def _device_kind():
    try:
        return jax.devices()[0].device_kind.lower()
    except Exception:
        return ""


def _vmem_capacity_bytes(kind):
    try:
        return int(pltpu.get_tpu_info().vmem_capacity_bytes)
    except Exception:
        # v7x has 64 MiB per TensorCore; v5e/v6e have 128 MiB.
        return (64 << 20) if ("v7" in kind or "7x" in kind) else (128 << 20)


def _pick_tile(total, cap, min_tiles=1):
    """Largest multiple of 128 dividing `total`, <= cap, giving >= min_tiles tiles."""
    min_tiles = max(1, min(min_tiles, total // _LANE))
    best = _LANE
    t = _LANE
    while t <= min(total, cap):
        if total % t == 0 and total // t >= min_tiles:
            best = t
        t += _LANE
    return best


def _discriminator_kernel(xT_ref, sT_ref, w_ref, out_ref, hT_ref, acc8_ref):
    n = pl.program_id(1)
    k = pl.program_id(2)
    last_n = pl.num_programs(1) - 1
    last_k = pl.num_programs(2) - 1

    # Per-batch-tile output accumulator: zero once, at the first (n, k) step.
    @pl.when(jnp.logical_and(n == 0, k == 0))
    def _():
        acc8_ref[...] = jnp.zeros_like(acc8_ref)

    # Per-(batch-tile, n) hT accumulator: zero at the first k step.
    @pl.when(k == 0)
    def _():
        hT_ref[...] = jnp.zeros_like(hT_ref)

    # hT[j, b] += sum_{k in block} W[k, j] * summary^T[k, b]
    # (contraction over dim 0 of both operands -> transposed-LHS MXU matmul,
    #  bf16 operands by default, f32 accumulation)
    hT_ref[...] += lax.dot_general(
        w_ref[...], sT_ref[...],
        dimension_numbers=(((0,), (0,)), ((), ())),
        preferred_element_type=jnp.float32,
    )                                                        # (tn, tb) f32

    # x^T multiply + partial reduce only once the k contraction is complete.
    @pl.when(k == last_k)
    def _():
        tn, tb = hT_ref.shape
        prod = xT_ref[...].astype(jnp.float32) * hT_ref[...]       # (tn, tb)
        # Fold sublane row-groups with pure VPU adds; the 8->1 cross-sublane
        # (XLU) reduce is deferred to the very last grid step.
        acc8_ref[...] += jnp.sum(
            prod.reshape(tn // _SUBLANE, _SUBLANE, tb), axis=0)

    @pl.when(jnp.logical_and(n == last_n, k == last_k))
    def _():
        out_ref[...] = jnp.sum(acc8_ref[...], axis=0, keepdims=True)


def local_global_discriminator(x, summary, weight, *,
                               matmul_dtype=jnp.bfloat16,
                               transposed_inputs=False,
                               tb=None, tn=None, tk=None):
    """x, summary: (B, H) [(H, B) if transposed_inputs], weight: (H, H).

    Returns (B,) float32 scores = sum(x * (summary @ W), axis=1).
    """
    if transposed_inputs:
        H, B = x.shape
        assert summary.shape == (H, B)
    else:
        B, H = x.shape
        assert summary.shape == (B, H)
    assert weight.shape == (H, H)

    kind = _device_kind()
    is_v5e = ("v5e" in kind) or ("v5 lite" in kind) or ("v5lite" in kind)
    is_v7 = ("v7" in kind) or ("7x" in kind)
    vmem_cap = _vmem_capacity_bytes(kind)
    vmem_cap_limit = (vmem_cap * 7) // 8     # leave headroom for the compiler

    H_pad = _round_up(H, _LANE)
    B_pad = _round_up(B, _LANE)

    if tb is None:
        # Minimize the number of batch tiles (W is fully re-streamed once per
        # batch tile), but keep both v7x TensorCores busy when B allows.
        min_btiles = 2 if (is_v7 and B_pad >= 2 * _LANE) else 1
        tb = _pick_tile(B_pad, cap=512, min_tiles=min_btiles)
    if tn is None:
        # v5e: 128-wide MXU + single vst slot -> tn=128; v6e/v7x: 256.
        tn = _LANE if is_v5e else _pick_tile(H_pad, cap=256)
    if tk is None:
        # Contraction tile: bounds per-step VMEM independently of H.
        tk = _pick_tile(H_pad, cap=1024)
    assert B_pad % tb == 0 and H_pad % tn == 0 and H_pad % tk == 0

    # Lane-dense transposed layout: batch on lanes, hidden on sublanes.
    # TODO(synk): callers that already keep activations in (H, B) layout can
    # pass transposed_inputs=True and skip this extra XLA transpose pass.
    if transposed_inputs:
        xT = _pad2d(x, H_pad, B_pad)
        sT = _pad2d(summary, H_pad, B_pad)
    else:
        xT = _pad2d(x, B_pad, H_pad).T          # (H_pad, B_pad)
        sT = _pad2d(summary, B_pad, H_pad).T    # (H_pad, B_pad)
    w = _pad2d(weight, H_pad, H_pad)            # (H_pad, H_pad), W[k, j]
    if matmul_dtype is not None:
        sT = sT.astype(matmul_dtype)            # MXU operand
        w = w.astype(matmul_dtype)              # MXU operand (dominant stream)
    # x stays in its input dtype (f32) for the VPU multiply.

    w_item = jnp.dtype(w.dtype).itemsize
    s_item = jnp.dtype(sT.dtype).itemsize
    x_item = jnp.dtype(xT.dtype).itemsize

    n_btiles = B_pad // tb
    n_ntiles = H_pad // tn
    n_ktiles = H_pad // tk
    n_w_blocks = n_ntiles * n_ktiles

    def vmem_needed(w_bufs):
        return (w_bufs * tk * tn * w_item          # W stream
                + 2 * tk * tb * s_item             # summary^T k-tiles
                + 2 * tn * tb * x_item             # x^T tiles
                + 2 * _SUBLANE * tb * 4            # out block (sublane-padded)
                + tn * tb * 4                      # hT accumulator scratch
                + _SUBLANE * tb * 4)               # (8, tb) partial accumulator

    # Triple-buffer the W stream on 128-MiB parts when it fits and there are
    # enough W blocks to pipeline (hides DMA jitter at step boundaries).
    use_w3 = (vmem_cap >= (96 << 20) and n_w_blocks >= 3
              and vmem_needed(3) + (4 << 20) <= vmem_cap_limit)
    w_bufs = 3 if use_w3 else 2

    needed = vmem_needed(w_bufs)
    if needed > vmem_cap_limit:
        raise ValueError(
            f"tile config (tb={tb}, tn={tn}, tk={tk}) needs {needed} B of VMEM"
            f" but only {vmem_cap_limit} B are available; use smaller tiles")
    vmem_limit = int(min(max(32 << 20, needed + (4 << 20)), vmem_cap_limit))

    if use_w3:
        w_spec = pl.BlockSpec((tk, tn), lambda i, n, k: (k, n),
                              pipeline_mode=pl.Buffered(3))
    else:
        w_spec = pl.BlockSpec((tk, tn), lambda i, n, k: (k, n))

    cost = pl.CostEstimate(
        flops=int(2 * B_pad * H_pad * H_pad + 3 * B_pad * H_pad),
        transcendentals=0,
        bytes_accessed=int(
            n_btiles * H_pad * H_pad * w_item             # W once per batch tile
            + n_btiles * n_ntiles * H_pad * tb * s_item   # summary^T per n block
            + B_pad * H_pad * x_item                      # x^T once per batch tile
            + B_pad * 4),                                 # output
    )

    out = pl.pallas_call(
        _discriminator_kernel,
        out_shape=jax.ShapeDtypeStruct((1, B_pad), jnp.float32),
        grid=(n_btiles, n_ntiles, n_ktiles),
        in_specs=[
            pl.BlockSpec((tn, tb), lambda i, n, k: (n, i)),    # x^T tile
            pl.BlockSpec((tk, tb), lambda i, n, k: (k, i)),    # summary^T tile
            w_spec,                                            # W (tk, tn) block
        ],
        out_specs=pl.BlockSpec((1, tb), lambda i, n, k: (0, i)),
        scratch_shapes=[pltpu.VMEM((tn, tb), jnp.float32),         # hT acc
                        pltpu.VMEM((_SUBLANE, tb), jnp.float32)],  # partials
        compiler_params=pltpu.CompilerParams(
            dimension_semantics=("parallel", "arbitrary", "arbitrary"),
            vmem_limit_bytes=vmem_limit,
        ),
        cost_estimate=cost,
    )(xT, sT, w)

    return out[0, :B]


def init_weight(hidden_dim, key):
    # Matches torch_geometric-style `uniform(size, tensor)`:
    # bound = 1/sqrt(size); U(-bound, bound)
    bound = 1.0 / math.sqrt(hidden_dim)
    return jax.random.uniform(
        key, (hidden_dim, hidden_dim), dtype=jnp.float32,
        minval=-bound, maxval=bound)


if __name__ == "__main__":
    key = jax.random.PRNGKey(0)
    k_x, k_s, k_w = jax.random.split(key, 3)

    batch_size = 32
    hidden_dim = 64   # toy size from the DeepChem docstring example

    x = jax.random.normal(k_x, (batch_size, hidden_dim), dtype=jnp.float32)
    summary = jax.random.normal(k_s, (batch_size, hidden_dim), dtype=jnp.float32)
    weight = init_weight(hidden_dim, k_w)

    # Default path: bf16 MXU operands, f32 accumulation.
    scores = local_global_discriminator(x, summary, weight)
    scores = jax.block_until_ready(scores)
    assert scores.shape == (batch_size,)

    # Reference with the same dtype policy (bf16-rounded operands, f32 math).
    ref_bf16 = jnp.sum(
        x * jnp.dot(summary.astype(jnp.bfloat16).astype(jnp.float32),
                    weight.astype(jnp.bfloat16).astype(jnp.float32),
                    precision=lax.Precision.HIGHEST),
        axis=1)
    assert jnp.allclose(scores, ref_bf16, atol=5e-3, rtol=5e-3), (
        float(jnp.max(jnp.abs(scores - ref_bf16))))

    # Full-f32 path sanity check (loose tolerance covers MXU f32-pass nuances).
    scores_f32 = local_global_discriminator(x, summary, weight,
                                             matmul_dtype=jnp.float32)
    scores_f32 = jax.block_until_ready(scores_f32)
    ref_f32 = jnp.sum(
        x * jnp.dot(summary, weight, precision=lax.Precision.HIGHEST), axis=1)
    assert jnp.allclose(scores_f32, ref_f32, atol=2e-2, rtol=2e-3), (
        float(jnp.max(jnp.abs(scores_f32 - ref_f32))))

    print("KERNEL_OK")
</pallas_src>

<mosaic_0001>
module attributes {stable_mosaic.version = 11 : i64} {
  func.func @_discriminator_kernel(%arg0: i32, %arg1: i32, %arg2: i32, %arg3: memref<128x128xf32, #tpu.memory_space<vmem>>, %arg4: memref<128x128xbf16, #tpu.memory_space<vmem>>, %arg5: memref<128x128xbf16, #tpu.memory_space<vmem>>, %arg6: memref<1x128xf32, #tpu.memory_space<vmem>>, %arg7: memref<128x128xf32, #tpu.memory_space<vmem>>, %arg8: memref<8x128xf32, #tpu.memory_space<vmem>>) attributes {dimension_semantics = [#tpu.dimension_semantics<parallel>, #tpu.dimension_semantics<arbitrary>, #tpu.dimension_semantics<arbitrary>], iteration_bounds = array<i64: 1, 1, 1>, scalar_prefetch = 0 : i64, scratch_operands = 2 : i64, tpu.core_type = #tpu.core_type<tc>, window_params = [{transform_indices = @transform_0, window_bounds = array<i64: 128, 128>}, {transform_indices = @transform_1, window_bounds = array<i64: 128, 128>}, {transform_indices = @transform_2, window_bounds = array<i64: 128, 128>}, {transform_indices = @transform_3, window_bounds = array<i64: 1, 128>}]} {
    %c0_i32 = arith.constant 0 : i32
    %0 = arith.cmpi eq, %arg1, %c0_i32 : i32
    %c0_i32_0 = arith.constant 0 : i32
    %1 = arith.cmpi eq, %arg2, %c0_i32_0 : i32
    %2 = arith.andi %0, %1 : i1
    %3 = arith.extui %2 : i1 to i32
    %c0_i32_1 = arith.constant 0 : i32
    %4 = arith.cmpi ne, %3, %c0_i32_1 : i32
    scf.if %4 {
      %cst_16 = arith.constant 0.000000e+00 : f32
      %22 = vector.broadcast %cst_16 : f32 to vector<8x128xf32>
      %c0_17 = arith.constant 0 : index
      %c0_18 = arith.constant 0 : index
      %23 = vector.load %arg8[%c0_17, %c0_18] : memref<8x128xf32, #tpu.memory_space<vmem>>, vector<8x128xf32>
      tpu.vector_store %arg8[%c0_17, %c0_18], %22 {strides = array<i32>} : memref<8x128xf32, #tpu.memory_space<vmem>>, vector<8x128xf32>,
    } else {
    }
    %c0_i32_2 = arith.constant 0 : i32
    %5 = arith.cmpi eq, %arg2, %c0_i32_2 : i32
    %6 = arith.extui %5 : i1 to i32
    %c0_i32_3 = arith.constant 0 : i32
    %7 = arith.cmpi ne, %6, %c0_i32_3 : i32
    scf.if %7 {
      %cst_16 = arith.constant 0.000000e+00 : f32
      %22 = vector.broadcast %cst_16 : f32 to vector<128x128xf32>
      %c0_17 = arith.constant 0 : index
      %c0_18 = arith.constant 0 : index
      %23 = vector.load %arg7[%c0_17, %c0_18] : memref<128x128xf32, #tpu.memory_space<vmem>>, vector<128x128xf32>
      tpu.vector_store %arg7[%c0_17, %c0_18], %22 {strides = array<i32>} : memref<128x128xf32, #tpu.memory_space<vmem>>, vector<128x128xf32>,
    } else {
    }
    %c0 = arith.constant 0 : index
    %c0_4 = arith.constant 0 : index
    %8 = vector.load %arg7[%c0, %c0_4] : memref<128x128xf32, #tpu.memory_space<vmem>>, vector<128x128xf32>
    %c0_5 = arith.constant 0 : index
    %c0_6 = arith.constant 0 : index
    %9 = vector.load %arg5[%c0_5, %c0_6] : memref<128x128xbf16, #tpu.memory_space<vmem>>, vector<128x128xbf16>
    %c0_7 = arith.constant 0 : index
    %c0_8 = arith.constant 0 : index
    %10 = vector.load %arg4[%c0_7, %c0_8] : memref<128x128xbf16, #tpu.memory_space<vmem>>, vector<128x128xbf16>
    %cst = arith.constant dense<0.000000e+00> : vector<128x128xf32>
    %11 = tpu.matmul %9, %10, %cst {dimension_numbers = #tpu.dot_dimension_numbers<[0], [0], [1], [1], [0, 1, 1, 1], [], []>} : vector<128x128xbf16>, vector<128x128xbf16>, vector<128x128xf32> -> vector<128x128xf32>
    %12 = arith.addf %8, %11 : vector<128x128xf32>
    %c0_9 = arith.constant 0 : index
    %c0_10 = arith.constant 0 : index
    %13 = vector.load %arg7[%c0_9, %c0_10] : memref<128x128xf32, #tpu.memory_space<vmem>>, vector<128x128xf32>
    tpu.vector_store %arg7[%c0_9, %c0_10], %12 {strides = array<i32>} : memref<128x128xf32, #tpu.memory_space<vmem>>, vector<128x128xf32>,
    %c0_i32_11 = arith.constant 0 : i32
    %14 = arith.cmpi eq, %arg2, %c0_i32_11 : i32
    %15 = arith.extui %14 : i1 to i32
    %c0_i32_12 = arith.constant 0 : i32
    %16 = arith.cmpi ne, %15, %c0_i32_12 : i32
    scf.if %16 {
      %c0_16 = arith.constant 0 : index
      %c0_17 = arith.constant 0 : index
      %22 = vector.load %arg3[%c0_16, %c0_17] : memref<128x128xf32, #tpu.memory_space<vmem>>, vector<128x128xf32>
      %c0_18 = arith.constant 0 : index
      %c0_19 = arith.constant 0 : index
      %23 = vector.load %arg7[%c0_18, %c0_19] : memref<128x128xf32, #tpu.memory_space<vmem>>, vector<128x128xf32>
      %24 = arith.mulf %22, %23 : vector<128x128xf32>
      %c0_20 = arith.constant 0 : index
      %c0_21 = arith.constant 0 : index
      %25 = vector.load %arg8[%c0_20, %c0_21] : memref<8x128xf32, #tpu.memory_space<vmem>>, vector<8x128xf32>
      %26 = vector.shape_cast %24 : vector<128x128xf32> to vector<16x8x128xf32>
      %cst_22 = arith.constant dense<0.000000e+00> : vector<8x128xf32>
      %27 = vector.multi_reduction <add>, %26, %cst_22 [0] : vector<16x8x128xf32> to vector<8x128xf32>
      %28 = arith.addf %25, %27 : vector<8x128xf32>
      %c0_23 = arith.constant 0 : index
      %c0_24 = arith.constant 0 : index
      %29 = vector.load %arg8[%c0_23, %c0_24] : memref<8x128xf32, #tpu.memory_space<vmem>>, vector<8x128xf32>
      tpu.vector_store %arg8[%c0_23, %c0_24], %28 {strides = array<i32>} : memref<8x128xf32, #tpu.memory_space<vmem>>, vector<8x128xf32>,
    } else {
    }
    %c0_i32_13 = arith.constant 0 : i32
    %17 = arith.cmpi eq, %arg1, %c0_i32_13 : i32
    %c0_i32_14 = arith.constant 0 : i32
    %18 = arith.cmpi eq, %arg2, %c0_i32_14 : i32
    %19 = arith.andi %17, %18 : i1
    %20 = arith.extui %19 : i1 to i32
    %c0_i32_15 = arith.constant 0 : i32
    %21 = arith.cmpi ne, %20, %c0_i32_15 : i32
    scf.if %21 {
      %c0_16 = arith.constant 0 : index
      %c0_17 = arith.constant 0 : index
      %22 = vector.load %arg8[%c0_16, %c0_17] : memref<8x128xf32, #tpu.memory_space<vmem>>, vector<8x128xf32>
      %cst_18 = arith.constant dense<0.000000e+00> : vector<128xf32>
      %23 = vector.multi_reduction <add>, %22, %cst_18 [0] : vector<8x128xf32> to vector<128xf32>
      %24 = vector.shape_cast %23 : vector<128xf32> to vector<1x128xf32>
      %c0_19 = arith.constant 0 : index
      %c0_20 = arith.constant 0 : index
      %25 = vector.load %arg6[%c0_19, %c0_20] : memref<1x128xf32, #tpu.memory_space<vmem>>, vector<1x128xf32>
      tpu.vector_store %arg6[%c0_19, %c0_20], %24 {strides = array<i32>} : memref<1x128xf32, #tpu.memory_space<vmem>>, vector<1x128xf32>,
    } else {
    }
    return
  }
  func.func @transform_0(%arg0: i32, %arg1: i32, %arg2: i32) -> (i32, i32) {
    %c0_i32 = arith.constant 0 : i32
    return %arg1, %arg0 : i32, i32
  }
  func.func @transform_1(%arg0: i32, %arg1: i32, %arg2: i32) -> (i32, i32) {
    %c0_i32 = arith.constant 0 : i32
    return %arg2, %arg0 : i32, i32
  }
  func.func @transform_2(%arg0: i32, %arg1: i32, %arg2: i32) -> (i32, i32) {
    %c0_i32 = arith.constant 0 : i32
    return %arg2, %arg1 : i32, i32
  }
  func.func @transform_3(%arg0: i32, %arg1: i32, %arg2: i32) -> (i32, i32) {
    %c0_i32 = arith.constant 0 : i32
    %c0_i32_0 = arith.constant 0 : i32
    return %c0_i32, %arg0 : i32, i32
  }
}

</mosaic_0001>

<bundles_post_ra>
// kernel: tpu_custom_call.1
= control target key start
LH: loop header
LB: loop body
LE: loop exit
PB: predicated region body
PF: predicated region fallthrough
CT: control target
= control target key end

     0   :  { %8 = vsyncpa [#allocation5], 0  ;;  %s747_s0 = inlined_call_operand.hbm [shape: f32[128,128], index: 0, kind: input, shape index: {}]   ;;  %s748_s1 = inlined_call_operand.hbm [shape: bf16[128,128], index: 1, kind: input, shape index: {}]   ;;  %s749_s2 = inlined_call_operand.hbm [shape: bf16[128,128], index: 2, kind: input, shape index: {}]   ;;  %s750_s3 = inlined_call_operand.hbm [shape: f32[1,128], index: 3, kind: output, shape index: {}]  }
   0x1   :  { %9 = vsyncpa [#allocation8], 0 }
   0x2   :  { %10 = vsyncpa [#allocation6], 0  ;;  %s665_s12 = smov [#allocation7]   ;;  %s571_s16 = scalar_lea.hbm %s748_s1, 1024 }
   0x3   :  { %s28_s13 = sshll.u32 %s665_s12, 4  ;;  %p572_p0 = scmp.ne.s32.totalorder %s748_s1, %s571_s16  ;;  %s29_s13 = int_to_ptr.vmem [resolvable:$true] %s28_s13 }
   0x4   :  { %p575_p1 = scmp.lt.u32.totalorder %s571_s16, %s748_s1 }
   0x6   :  { %p577_p2 = pnand %p575_p1, %p572_p0 }
   0x8   :  { %580 = shalt.err (!%p577_p2)
}
   0x9   :  { %s581_s21 = scalar_lea.vmem %s29_s13, 1024  ;;  %p586_p4 = scmp.lt.s32.totalorder %s29_s13, %s29_s13 }
   0xa   :  { %p582_p3 = scmp.ne.s32.totalorder %s29_s13, %s581_s21  ;;  %p587_p5 = scmp.lt.s32.totalorder %s581_s21, %s581_s21 }
   0xc   :  { %p588_p6 = por %p587_p5, %p586_p4 }
   0xe   :  { %p589_p7 = pnand %p588_p6, %p582_p3 }
  0x10   :  { %592 = shalt.err (!%p589_p7)
}
  0x11   :  { %s666_s22 = smov 64   ;;  %s667_s23 = smov 4  }
  0x12   :  { %34 = dma.hbm_to_vmem [thread:$0]  %s748_s1, 1024, %s29_s13, [#allocation8], %s666_s22, %s666_s22, %s667_s23  }
  0x13   :  { %s668_s26 = smov [#allocation4]   ;;  %s593_s30 = scalar_lea.hbm %s747_s0, 2048 }
  0x14   :  { %s16_s27 = sshll.u32 %s668_s26, 4  ;;  %p594_p8 = scmp.ne.s32.totalorder %s747_s0, %s593_s30  ;;  %s17_s27 = int_to_ptr.vmem [resolvable:$true] %s16_s27 }
  0x15   :  { %p597_p9 = scmp.lt.u32.totalorder %s593_s30, %s747_s0 }
  0x17   :  { %p599_p10 = pnand %p597_p9, %p594_p8 }
  0x19   :  { %602 = shalt.err (!%p599_p10)
}
  0x1a   :  { %s603_s8 = scalar_lea.vmem %s17_s27, 2048  ;;  %p608_p12 = scmp.lt.s32.totalorder %s17_s27, %s17_s27 }
  0x1b   :  { %p604_p11 = scmp.ne.s32.totalorder %s17_s27, %s603_s8  ;;  %p609_p13 = scmp.lt.s32.totalorder %s603_s8, %s603_s8 }
  0x1d   :  { %p610_p0 = por %p609_p13, %p608_p12 }
  0x1f   :  { %p611_p1 = pnand %p610_p0, %p604_p11 }
  0x21   :  { %614 = shalt.err (!%p611_p1)
}
  0x22   :  { %s669_s1 = smov 128   ;;  %s670_s9 = smov 8  }
  0x23   :  { %22 = dma.hbm_to_vmem [thread:$0]  %s747_s0, 2048, %s17_s27, [#allocation5], %s669_s1, %s669_s1, %s670_s9  }
  0x24   :  { %s671_s12 = smov [#allocation9]   ;;  %s615_s16 = scalar_lea.hbm %s749_s2, 1024 }
  0x25   :  { %s40_s13 = sshll.u32 %s671_s12, 4  ;;  %p616_p2 = scmp.ne.s32.totalorder %s749_s2, %s615_s16  ;;  %s41_s13 = int_to_ptr.vmem [resolvable:$true] %s40_s13 }
  0x26   :  { %p619_p3 = scmp.lt.u32.totalorder %s615_s16, %s749_s2 }
  0x28   :  { %p621_p4 = pnand %p619_p3, %p616_p2 }
  0x2a   :  { %624 = shalt.err (!%p621_p4)
}
  0x2b   :  { %s625_s21 = scalar_lea.vmem %s41_s13, 1024  ;;  %p630_p6 = scmp.lt.s32.totalorder %s41_s13, %s41_s13 }
  0x2c   :  { %p626_p5 = scmp.ne.s32.totalorder %s41_s13, %s625_s21  ;;  %p631_p7 = scmp.lt.s32.totalorder %s625_s21, %s625_s21 }
  0x2e   :  { %p632_p8 = por %p631_p7, %p630_p6 }
  0x30   :  { %p633_p9 = pnand %p632_p8, %p626_p5 }
  0x32   :  { %636 = shalt.err (!%p633_p9)
}
  0x33   :  { %46 = dma.hbm_to_vmem [thread:$0]  %s749_s2, 1024, %s41_s13, [#allocation8], %s666_s22, %s666_s22, %s667_s23  }
  0x34   :  { %659 = dma.done.wait [#allocation5], 2048  }
  0x35   :  { %660 = vsyncadd [#allocation5], 4294965248 }
  0x36   :  { %661 = dma.done.wait [#allocation8], 2048  }
  0x37   :  { %662 = vsyncadd [#allocation8], 4294965248  ;;  %v555_v0 = vld [vmem:[#allocation9] sm:$0xff]   ;;  %v556_v1 = vld [vmem:[#allocation9 + $0x8] sm:$0xff]   ;;  %s672_s2 = smov [#allocation10]  }
  0x38   :  { %179 = vxpose.xlu0.c.b16.start [1/8] %v555_v0, 128  ;;  %v557_v2 = vld [vmem:[#allocation9 + $0x10] sm:$0xff]   ;;  %v563_v3 = vld [vmem:[#allocation7] sm:$0xff]   ;;  %v564_v4 = vld [vmem:[#allocation7 + $0x8] sm:$0xff]   ;;  %s457_s22 = sshll.u32 %s672_s2, 4  ;;  %s458_s22 = int_to_ptr.vmem [resolvable:$true] %s457_s22 }
  0x39   :  { %v558_v5 = vld [vmem:[#allocation9 + $0x18] sm:$0xff]   ;;  %499 = vmatprep.subr.bf16.mxu0 %v563_v3  ;;  %531 = vmatprep.subr.bf16.mxu1 %v563_v3  ;;  %v565_v6 = vld [vmem:[#allocation7 + $0x10] sm:$0xff]   ;;  %v559_v7 = vld [vmem:[#allocation9 + $0x20] sm:$0xff]   ;;  %s637_s23 = scalar_lea.vmem %s458_s22, 16  ;;  %s641_s25 = scalar_lea.vmem %s458_s22, 32 }
  0x3a   :  { %500 = vmatpush3.bf16.msra.mxu0 %v563_v3  ;;  %539 = vmatpush3.bf16.msra.mxu1 %v563_v3  ;;  %v566_v8 = vld [vmem:[#allocation7 + $0x18] sm:$0xff]   ;;  %v560_v9 = vld [vmem:[#allocation9 + $0x28] sm:$0xff]   ;;  %v567_v10 = vld [vmem:[#allocation7 + $0x20] sm:$0xff]   ;;  %p638_p10 = scmp.ne.s32.totalorder %s458_s22, %s637_s23  ;;  %p642_p11 = scmp.lt.s32.totalorder %s458_s22, %s458_s22 }
  0x3b   :  { %501 = vmatprep.subr.bf16.mxu0 %v564_v4  ;;  %532 = vmatprep.subr.bf16.mxu1 %v564_v4  ;;  %v561_v11 = vld [vmem:[#allocation9 + $0x30] sm:$0xff]   ;;  %v568_v12 = vld [vmem:[#allocation7 + $0x28] sm:$0xff]   ;;  %v562_v13 = vld [vmem:[#allocation9 + $0x38] sm:$0xff]   ;;  %p643_p12 = scmp.lt.s32.totalorder %s641_s25, %s637_s23 }
  0x3c   :  { %180 = vxpose.xlu0.c.b16.cont [2/8] %v556_v1, 128  ;;  %v569_v14 = vld [vmem:[#allocation7 + $0x30] sm:$0xff]   ;;  %v570_v15 = vld [vmem:[#allocation7 + $0x38] sm:$0xff]   ;;  %v375_v26 = vld [vmem:[#allocation4] sm:$0xff] }
  0x3d   :  { %v376_v27 = vld [vmem:[#allocation4 + $0x8] sm:$0xff]  ;;  %v377_v29 = vld [vmem:[#allocation4 + $0x10] sm:$0xff]  ;;  %v378_v33 = vld [vmem:[#allocation4 + $0x18] sm:$0xff]  ;;  %p644_p13 = por %p643_p12, %p642_p11 }
  0x3e   :  { %502 = vmatpush3.bf16.msra.mxu0 %v564_v4  ;;  %540 = vmatpush3.bf16.msra.mxu1 %v564_v4  ;;  %v379_v36 = vld [vmem:[#allocation4 + $0x20] sm:$0xff]  ;;  %v380_v41 = vld [vmem:[#allocation4 + $0x28] sm:$0xff]  ;;  %v381_v45 = vld [vmem:[#allocation4 + $0x30] sm:$0xff] }
  0x3f   :  { %503 = vmatprep.subr.bf16.mxu0 %v565_v6  ;;  %533 = vmatprep.subr.bf16.mxu1 %v565_v6  ;;  %v382_v49 = vld [vmem:[#allocation4 + $0x38] sm:$0xff]  ;;  %v383_v52 = vld [vmem:[#allocation4 + $0x40] sm:$0xff]  ;;  %v384_v57 = vld [vmem:[#allocation4 + $0x48] sm:$0xff]  ;;  %p645_p0 = pnand %p644_p13, %p638_p10 }
  0x40   :  { %181 = vxpose.xlu0.c.b16.cont [3/8] %v557_v2, 128  ;;  %v385_v61 = vld [vmem:[#allocation4 + $0x50] sm:$0xff]  ;;  %v386_v1 = vld [vmem:[#allocation4 + $0x58] sm:$0xff]  ;;  %v387_v4 = vld [vmem:[#allocation4 + $0x60] sm:$0xff] }
  0x42   :  { %504 = vmatpush3.bf16.msra.mxu0 %v565_v6  ;;  %541 = vmatpush3.bf16.msra.mxu1 %v565_v6 }
  0x43   :  { %505 = vmatprep.subr.bf16.mxu0 %v566_v8  ;;  %534 = vmatprep.subr.bf16.mxu1 %v566_v8 }
  0x44   :  { %182 = vxpose.xlu0.c.b16.cont [4/8] %v558_v5, 128 }
  0x46   :  { %506 = vmatpush3.bf16.msra.mxu0 %v566_v8  ;;  %542 = vmatpush3.bf16.msra.mxu1 %v566_v8 }
  0x47   :  { %507 = vmatprep.subr.bf16.mxu0 %v567_v10  ;;  %535 = vmatprep.subr.bf16.mxu1 %v567_v10 }
  0x48   :  { %183 = vxpose.xlu0.c.b16.cont [5/8] %v559_v7, 128 }
  0x4a   :  { %508 = vmatpush3.bf16.msra.mxu0 %v567_v10  ;;  %543 = vmatpush3.bf16.msra.mxu1 %v567_v10 }
  0x4b   :  { %509 = vmatprep.subr.bf16.mxu0 %v568_v12  ;;  %536 = vmatprep.subr.bf16.mxu1 %v568_v12 }
  0x4c   :  { %184 = vxpose.xlu0.c.b16.cont [6/8] %v560_v9, 128  ;;  %v388_v9 = vld [vmem:[#allocation4 + $0x68] sm:$0xff] }
  0x4e   :  { %510 = vmatpush3.bf16.msra.mxu0 %v568_v12  ;;  %544 = vmatpush3.bf16.msra.mxu1 %v568_v12 }
  0x4f   :  { %511 = vmatprep.subr.bf16.mxu0 %v569_v14  ;;  %537 = vmatprep.subr.bf16.mxu1 %v569_v14 }
  0x50   :  { %185 = vxpose.xlu0.c.b16.cont [7/8] %v561_v11, 128 }
  0x52   :  { %512 = vmatpush3.bf16.msra.mxu0 %v569_v14  ;;  %545 = vmatpush3.bf16.msra.mxu1 %v569_v14 }
  0x53   :  { %513 = vmatprep.subr.bf16.mxu0 %v570_v15  ;;  %538 = vmatprep.subr.bf16.mxu1 %v570_v15 }
  0x54   :  { %186 = vxpose.xlu0.c.b16.end [8/8] %v562_v13, 128  ;;  %v389_v13 = vld [vmem:[#allocation4 + $0x70] sm:$0xff] }
  0x56   :  { %514 = vmatpush3.bf16.msra.mxu0 %v570_v15  ;;  %546 = vmatpush3.bf16.msra.mxu1 %v570_v15 }
  0x9e   :  { %v187_v16 = vpop.trf.xlu0 }
  0x9f   :  { %515 = vmatprep.mubr.bf16.mxu0 %v187_v16 }
  0xa2   :  { %v188_v17 = vpop.trf.xlu0 }
  0xa3   :  { %516 = vmatmul.mubr.bf16.vlgmr.msra.gmra.mrb[0].mxu0 %v188_v17  ;;  %v390_v17 = vld [vmem:[#allocation4 + $0x78] sm:$0xff] }
  0xa6   :  { %v189_v18 = vpop.trf.xlu0 }
  0xa7   :  { %519 = vmatprep.mubr.bf16.mxu0 %v189_v18 }
  0xaa   :  { %v190_v19 = vpop.trf.xlu0 }
  0xab   :  { %520 = vmatmul.mubr.bf16.gmra.mrb[4].mxu0 %v190_v19 }
  0xae   :  { %v191_v20 = vpop.trf.xlu0 }
  0xaf   :  { %523 = vmatprep.mubr.bf16.mxu1 %v191_v20 }
  0xb2   :  { %v192_v21 = vpop.trf.xlu0 }
  0xb3   :  { %524 = vmatmul.mubr.bf16.vlgmr.msra.gmra.mrb[0].mxu1 %v192_v21 }
  0xb6   :  { %v193_v22 = vpop.trf.xlu0 }
  0xb7   :  { %527 = vmatprep.mubr.bf16.mxu1 %v193_v22 }
  0xba   :  { %v194_v23 = vpop.trf.xlu0 }
  0xbb   :  { %528 = vmatmul.mubr.bf16.gmra.mrb[4].mxu1 %v194_v23 }
 0x176   :  { %v517_v24 = vpop.f32.mrb[0].mxu0 }
 0x177   :  { %v277_v25 = vpop.f32.mrb[1].mxu0  ;;  %v409_v34 = vmul.f32 %v517_v24, %v377_v29 }
 0x178   :  { %v518_v28 = vpop.f32.mrb[2].mxu0  ;;  %v407_v31 = vmul.f32 %v375_v26, %v277_v25 }
 0x179   :  { %v280_v30 = vpop.f32.mrb[3].mxu0  ;;  %v410_v37 = vmul.f32 %v518_v28, %v378_v33 }
 0x17a   :  { %v408_v32 = vmul.f32 %v376_v27, %v280_v30 }
 0x17c   :  { %v424_v35 = vadd.f32 %v408_v32, %v407_v31 }
 0x17e   :  { %v425_v38 = vadd.f32 %v424_v35, %v409_v34  ;;  %v521_v39 = vpop.f32.mrb[4].mxu0 }
 0x17f   :  { %v293_v40 = vpop.f32.mrb[5].mxu0  ;;  %v413_v50 = vmul.f32 %v521_v39, %v381_v45 }
 0x180   :  { %v411_v42 = vmul.f32 %v379_v36, %v293_v40  ;;  %v426_v43 = vadd.f32 %v425_v38, %v410_v37  ;;  %v522_v44 = vpop.f32.mrb[6].mxu0 }
 0x181   :  { %v296_v46 = vpop.f32.mrb[7].mxu0  ;;  %v414_v53 = vmul.f32 %v522_v44, %v382_v49 }
 0x182   :  { %v427_v47 = vadd.f32 %v426_v43, %v411_v42  ;;  %v412_v48 = vmul.f32 %v380_v41, %v296_v46 }
 0x184   :  { %v428_v51 = vadd.f32 %v427_v47, %v412_v48 }
 0x186   :  { %v429_v54 = vadd.f32 %v428_v51, %v413_v50  ;;  %v525_v55 = vpop.f32.mrb[0].mxu1 }
 0x187   :  { %v309_v56 = vpop.f32.mrb[1].mxu1  ;;  %v417_v2 = vmul.f32 %v525_v55, %v385_v61 }
 0x188   :  { %v415_v58 = vmul.f32 %v383_v52, %v309_v56  ;;  %v430_v59 = vadd.f32 %v429_v54, %v414_v53  ;;  %v526_v60 = vpop.f32.mrb[2].mxu1 }
 0x189   :  { %v312_v62 = vpop.f32.mrb[3].mxu1  ;;  %v418_v5 = vmul.f32 %v526_v60, %v386_v1 }
 0x18a   :  { %v431_v63 = vadd.f32 %v430_v59, %v415_v58  ;;  %v416_v0 = vmul.f32 %v384_v57, %v312_v62 }
 0x18c   :  { %v432_v3 = vadd.f32 %v431_v63, %v416_v0 }
 0x18e   :  { %v433_v6 = vadd.f32 %v432_v3, %v417_v2  ;;  %v529_v7 = vpop.f32.mrb[4].mxu1 }
 0x18f   :  { %v325_v8 = vpop.f32.mrb[5].mxu1  ;;  %v421_v18 = vmul.f32 %v529_v7, %v389_v13 }
 0x190   :  { %v419_v10 = vmul.f32 %v387_v4, %v325_v8  ;;  %v434_v11 = vadd.f32 %v433_v6, %v418_v5  ;;  %v530_v12 = vpop.f32.mrb[6].mxu1 }
 0x191   :  { %v328_v14 = vpop.f32.mrb[7].mxu1  ;;  %v422_v20 = vmul.f32 %v530_v12, %v390_v17 }
 0x192   :  { %v435_v15 = vadd.f32 %v434_v11, %v419_v10  ;;  %v420_v16 = vmul.f32 %v388_v9, %v328_v14 }
 0x194   :  { %v436_v19 = vadd.f32 %v435_v15, %v420_v16 }
 0x196   :  { %v437_v21 = vadd.f32 %v436_v19, %v421_v18 }
 0x198   :  { %v438_v22 = vadd.f32 %v437_v21, %v422_v20 }
 0x19a   :  { %v444_v23 = vrot.slane %v438_v22, 4 }
 0x19c   :  { %v445_v24 = vadd.f32 %v444_v23, %v438_v22 }
 0x19e   :  { %v446_v25 = vrot.slane %v445_v24, 2 }
 0x1a0   :  { %v447_v26 = vadd.f32 %v446_v25, %v445_v24 }
 0x1a2   :  { %v448_v27 = vrot.slane %v447_v26, 1 }
 0x1a4   :  { %v449_v28 = vadd.f32 %v448_v27, %v447_v26 }
 0x1a6   :  { %450 = vst [vmem:[#allocation10] sm:$0x1] %v449_v28 }
 0x1a7   :  { %648 = shalt.err (!%p645_p0)
}
 0x1a8   :  { %s649_s28 = scalar_lea.hbm %s750_s3, 16 }
 0x1a9   :  { %p650_p1 = scmp.ne.s32.totalorder %s750_s3, %s649_s28  ;;  %p653_p2 = scmp.lt.u32.totalorder %s649_s28, %s750_s3 }
 0x1ab   :  { %p655_p3 = pnand %p653_p2, %p650_p1 }
 0x1ad   :  { %658 = shalt.err (!%p655_p3)
}
 0x1ae   :  { %460 = dma.vmem_to_hbm [thread:$0]  %s458_s22, 16, %s750_s3, [#allocation6]  }
 0x1af   :  { %663 = dma.done.wait [#allocation6], 16  }
 0x1b0   :  { %664 = vsyncadd [#allocation6], 4294967280 }
 0x1b1   :  { %464 = vsyncpa [#allocation5], 1 }
 0x1b2   :  { %465 = vsyncpa [#allocation8], 1 }
 0x1b3   :  { %466 = vsyncpa [#allocation6], 1 }

</bundles_post_ra>
